<compile_context>
chip_gen: v5e
topology: v5e:2x2
jax: 0.10.0
libtpu: 0.0.40
codegen_flags: <defaults>
</compile_context>

<pallas_src>
import numpy as np

import jax
import jax.numpy as jnp
from jax.experimental import pallas as pl
from jax.experimental.pallas import tpu as pltpu


def _rpad(n, m):
    return ((n + m - 1) // m) * m


# ----------------------------- one-time param packing ------------------------
def pack_params(weights, biases, state_dim):
    """Pack all layer weights/biases into ONE zero-padded lane-dense buffer.

    weights[i]: (n_in_i, n_out_i)  (already transposed from PyTorch (out, in))
    biases[i]:  (1, n_out_i) or (n_out_i,)

    Row layout (all blocks 8-row aligned, columns padded to P = multiple of 128):
      [w0x]  rows of W0 that multiply x            (state_dim, n_out_0)
      [w0e]  rows of W0 that multiply embeddings   (code_dim,  n_out_0)
      [w1..] (P, P) zero-padded hidden/output weights
      [b]    one row per layer bias, zero-padded to P (block padded to 8 rows)
    """
    n_linear = len(weights)
    out_dims = [int(w.shape[1]) for w in weights]
    code_dim = int(weights[0].shape[0]) - state_dim
    P = _rpad(max(out_dims), 128)

    offs = {}
    r = 0
    offs["w0x"] = r
    r += _rpad(state_dim, 8)
    offs["w0e"] = r
    r += _rpad(code_dim, 8)
    for i in range(1, n_linear):
        offs[f"w{i}"] = r
        r += P
    offs["b"] = r
    b_rows = _rpad(n_linear, 8)
    r += b_rows
    R = r

    buf = np.zeros((R, P), np.float32)
    w0 = np.asarray(weights[0], np.float32)
    buf[offs["w0x"]:offs["w0x"] + state_dim, :out_dims[0]] = w0[:state_dim]
    buf[offs["w0e"]:offs["w0e"] + code_dim, :out_dims[0]] = w0[state_dim:]
    for i in range(1, n_linear):
        wi = np.asarray(weights[i], np.float32)
        buf[offs[f"w{i}"]:offs[f"w{i}"] + wi.shape[0], :wi.shape[1]] = wi
    for i in range(n_linear):
        bi = np.asarray(biases[i], np.float32).reshape(-1)
        buf[offs["b"] + i, :bi.shape[0]] = bi

    meta = dict(n_linear=n_linear, state_dim=state_dim, code_dim=code_dim,
                out_dims=tuple(out_dims), P=P, R=R, b_rows=b_rows, offs=offs)
    return jnp.asarray(buf), meta


# ----------------------------- Pallas kernel + wrapper -----------------------
def make_ode_forward(meta, batch, x_dtype=jnp.float32):
    n_linear = meta["n_linear"]
    sd = meta["state_dim"]
    cd = meta["code_dim"]
    P = meta["P"]
    R = meta["R"]
    b_rows = meta["b_rows"]
    offs = meta["offs"]
    out_dim = meta["out_dims"][-1]

    bb = batch if batch <= 256 else 256          # batch tile (rows)
    grid = (pl.cdiv(batch, bb),)

    def kernel(x_ref, e_ref, p_ref, o_ref):
        x = x_ref[...].astype(jnp.float32)                       # (bb, sd)
        e = e_ref[...].astype(jnp.float32)                       # (bb, cd)
        bias = p_ref[pl.ds(offs["b"], b_rows), :]                # (8k, P) aligned load

        # Layer 0: concat folded into two matmuls (x-part + embedding-part).
        w0x = p_ref[pl.ds(offs["w0x"], sd), :]                   # (sd, P)
        w0e = p_ref[pl.ds(offs["w0e"], cd), :]                   # (cd, P)
        h = (jnp.dot(x, w0x, preferred_element_type=jnp.float32)
             + jnp.dot(e, w0e, preferred_element_type=jnp.float32)
             + bias[0:1, :])
        if n_linear > 1:
            h = jnp.tanh(h)                                      # latent_act == 'tanh'

        # Remaining layers: lane-dense (bb, P) @ (P, P); padded weight cols /
        # bias cols are zero and tanh(0) == 0, so the padding stays zero.
        for i in range(1, n_linear):
            wi = p_ref[pl.ds(offs[f"w{i}"], P), :]               # (P, P)
            h = jnp.dot(h, wi, preferred_element_type=jnp.float32) + bias[i:i + 1, :]
            if i < n_linear - 1:
                h = jnp.tanh(h)

        o_ref[...] = h[:, :out_dim].astype(o_ref.dtype)

    call = pl.pallas_call(
        kernel,
        out_shape=jax.ShapeDtypeStruct((batch, out_dim), x_dtype),
        grid=grid,
        in_specs=[
            pl.BlockSpec((bb, sd), lambda i: (i, 0)),
            pl.BlockSpec((bb, cd), lambda i: (i, 0)),
            pl.BlockSpec((R, P), lambda i: (0, 0)),   # params: resident, one DMA
        ],
        out_specs=pl.BlockSpec((bb, out_dim), lambda i: (i, 0)),
        compiler_params=pltpu.CompilerParams(
            dimension_semantics=("parallel",)),       # shard batch tiles across TCs (v7x)
    )

    @jax.jit
    def forward(t, x, embeddings, packed_params):
        del t  # unused, same as the PyTorch forward
        return call(x, embeddings, packed_params)

    return forward


# ----------------------------- Reference (pure JAX) ---------------------------
def ode_forward_ref(t, x, embeddings, weights, biases):
    del t
    h = jnp.concatenate((x, embeddings), axis=1).astype(jnp.float32)
    for i, (w, b) in enumerate(zip(weights, biases)):
        h = h @ w.astype(jnp.float32) + b.astype(jnp.float32)
        if i < len(weights) - 1:
            h = jnp.tanh(h)
    return h


# ----------------------------- Parameter init --------------------------------
def init_linear(key, n_in, n_out, dtype=jnp.float32):
    """PyTorch nn.Linear default init: U(-1/sqrt(n_in), 1/sqrt(n_in))."""
    kw, kb = jax.random.split(key)
    bound = 1.0 / jnp.sqrt(jnp.float32(n_in))
    # PyTorch stores weight as (n_out, n_in); keep (n_in, n_out) so y = x @ W + b.
    w = jax.random.uniform(kw, (n_in, n_out), dtype, -bound, bound)
    b = jax.random.uniform(kb, (1, n_out), dtype, -bound, bound)
    return w, b


if __name__ == "__main__":
    # Small shapes consistent with the module:
    #   latent_dim = 32 (post-concat feature dim), code_dim = 8 -> state dim 24
    #   num_layers = 2, num_hidden = 64, batch_size (n_groups) = 8
    latent_dim = 32
    code_dim = 8
    state_dim = latent_dim - code_dim
    num_layers = 2
    num_hidden = 64
    batch = 8

    layers_dim = [latent_dim] + num_layers * [num_hidden] + [latent_dim]

    key = jax.random.PRNGKey(0)
    kx, ke, kp = jax.random.split(key, 3)

    x = jax.random.normal(kx, (batch, state_dim), jnp.float32)
    # self.embeddings: vstacked local codes, one per sample in the batch
    embeddings = jax.random.normal(ke, (batch, code_dim), jnp.float32)

    weights, biases = [], []
    pkeys = jax.random.split(kp, len(layers_dim) - 1)
    for k, n_in, n_out in zip(pkeys, layers_dim[:-1], layers_dim[1:]):
        w, b = init_linear(k, n_in, n_out)
        weights.append(w)
        biases.append(b)

    # One-time "module init": pack params into a single lane-dense buffer.
    packed_params, meta = pack_params(weights, biases, state_dim)
    ode_forward = make_ode_forward(meta, batch, x_dtype=jnp.float32)

    t = jnp.float32(0.0)  # unused by forward, kept for signature parity

    out = ode_forward(t, x, embeddings, packed_params)
    out = jax.block_until_ready(out)

    ref = ode_forward_ref(t, x, embeddings, weights, biases)
    assert out.shape == (batch, latent_dim), out.shape
    assert jnp.allclose(out, ref, atol=1e-5, rtol=1e-5), "mismatch vs reference"

    print("KERNEL_OK")
</pallas_src>

<mosaic_0001>
module attributes {stable_mosaic.version = 11 : i64} {
  func.func @kernel(%arg0: i32, %arg1: memref<8x24xf32, #tpu.memory_space<vmem>>, %arg2: memref<8x8xf32, #tpu.memory_space<vmem>>, %arg3: memref<296x128xf32, #tpu.memory_space<vmem>>, %arg4: memref<8x32xf32, #tpu.memory_space<vmem>>) attributes {dimension_semantics = [#tpu.dimension_semantics<parallel>], iteration_bounds = array<i64: 1>, scalar_prefetch = 0 : i64, scratch_operands = 0 : i64, tpu.core_type = #tpu.core_type<tc>, window_params = [{transform_indices = @transform_0, window_bounds = array<i64: 8, 24>}, {transform_indices = @transform_1, window_bounds = array<i64: 8, 8>}, {pipeline_mode = #tpu.pipeline_mode<synchronous>, transform_indices = @transform_2, window_bounds = array<i64: 296, 128>}, {transform_indices = @transform_3, window_bounds = array<i64: 8, 32>}]} {
    %c0 = arith.constant 0 : index
    %c0_0 = arith.constant 0 : index
    %0 = vector.load %arg1[%c0, %c0_0] : memref<8x24xf32, #tpu.memory_space<vmem>>, vector<8x24xf32>
    %c0_1 = arith.constant 0 : index
    %c0_2 = arith.constant 0 : index
    %1 = vector.load %arg2[%c0_1, %c0_2] : memref<8x8xf32, #tpu.memory_space<vmem>>, vector<8x8xf32>
    %c288 = arith.constant 288 : index
    %c0_3 = arith.constant 0 : index
    %2 = vector.load %arg3[%c288, %c0_3] : memref<296x128xf32, #tpu.memory_space<vmem>>, vector<8x128xf32>
    %c0_4 = arith.constant 0 : index
    %c0_5 = arith.constant 0 : index
    %3 = vector.load %arg3[%c0_4, %c0_5] : memref<296x128xf32, #tpu.memory_space<vmem>>, vector<24x128xf32>
    %c24 = arith.constant 24 : index
    %c0_6 = arith.constant 0 : index
    %4 = vector.load %arg3[%c24, %c0_6] : memref<296x128xf32, #tpu.memory_space<vmem>>, vector<8x128xf32>
    %cst = arith.constant dense<0.000000e+00> : vector<8x128xf32>
    %5 = tpu.matmul %0, %3, %cst {dimension_numbers = #tpu.dot_dimension_numbers<[1], [0], [0], [1], [0, 0, 1, 1], [], []>} : vector<8x24xf32>, vector<24x128xf32>, vector<8x128xf32> -> vector<8x128xf32>
    %cst_7 = arith.constant dense<0.000000e+00> : vector<8x128xf32>
    %6 = tpu.matmul %1, %4, %cst_7 {dimension_numbers = #tpu.dot_dimension_numbers<[1], [0], [0], [1], [0, 0, 1, 1], [], []>} : vector<8x8xf32>, vector<8x128xf32>, vector<8x128xf32> -> vector<8x128xf32>
    %7 = arith.addf %5, %6 : vector<8x128xf32>
    %8 = vector.extract_strided_slice %2 {offsets = [0, 0], sizes = [1, 128], strides = [1, 1]} : vector<8x128xf32> to vector<1x128xf32>
    %9 = vector.broadcast %8 : vector<1x128xf32> to vector<8x128xf32>
    %10 = arith.addf %7, %9 : vector<8x128xf32>
    %11 = math.tanh %10 : vector<8x128xf32>
    %c32 = arith.constant 32 : index
    %c0_8 = arith.constant 0 : index
    %12 = vector.load %arg3[%c32, %c0_8] : memref<296x128xf32, #tpu.memory_space<vmem>>, vector<128x128xf32>
    %cst_9 = arith.constant dense<0.000000e+00> : vector<8x128xf32>
    %13 = tpu.matmul %11, %12, %cst_9 {dimension_numbers = #tpu.dot_dimension_numbers<[1], [0], [0], [1], [0, 0, 1, 1], [], []>} : vector<8x128xf32>, vector<128x128xf32>, vector<8x128xf32> -> vector<8x128xf32>
    %14 = vector.extract_strided_slice %2 {offsets = [1, 0], sizes = [1, 128], strides = [1, 1]} : vector<8x128xf32> to vector<1x128xf32>
    %15 = vector.broadcast %14 : vector<1x128xf32> to vector<8x128xf32>
    %16 = arith.addf %13, %15 : vector<8x128xf32>
    %17 = math.tanh %16 : vector<8x128xf32>
    %c160 = arith.constant 160 : index
    %c0_10 = arith.constant 0 : index
    %18 = vector.load %arg3[%c160, %c0_10] : memref<296x128xf32, #tpu.memory_space<vmem>>, vector<128x128xf32>
    %cst_11 = arith.constant dense<0.000000e+00> : vector<8x128xf32>
    %19 = tpu.matmul %17, %18, %cst_11 {dimension_numbers = #tpu.dot_dimension_numbers<[1], [0], [0], [1], [0, 0, 1, 1], [], []>} : vector<8x128xf32>, vector<128x128xf32>, vector<8x128xf32> -> vector<8x128xf32>
    %20 = vector.extract_strided_slice %2 {offsets = [2, 0], sizes = [1, 128], strides = [1, 1]} : vector<8x128xf32> to vector<1x128xf32>
    %21 = vector.broadcast %20 : vector<1x128xf32> to vector<8x128xf32>
    %22 = arith.addf %19, %21 : vector<8x128xf32>
    %23 = vector.extract_strided_slice %22 {offsets = [0, 0], sizes = [8, 32], strides = [1, 1]} : vector<8x128xf32> to vector<8x32xf32>
    %c0_12 = arith.constant 0 : index
    %c0_13 = arith.constant 0 : index
    %24 = vector.load %arg4[%c0_12, %c0_13] : memref<8x32xf32, #tpu.memory_space<vmem>>, vector<8x32xf32>
    tpu.vector_store %arg4[%c0_12, %c0_13], %23 {strides = array<i32>} : memref<8x32xf32, #tpu.memory_space<vmem>>, vector<8x32xf32>,
    return
  }
  func.func @transform_0(%arg0: i32) -> (i32, i32) {
    %c0_i32 = arith.constant 0 : i32
    %c0_i32_0 = arith.constant 0 : i32
    return %arg0, %c0_i32 : i32, i32
  }
  func.func @transform_1(%arg0: i32) -> (i32, i32) {
    %c0_i32 = arith.constant 0 : i32
    %c0_i32_0 = arith.constant 0 : i32
    return %arg0, %c0_i32 : i32, i32
  }
  func.func @transform_2(%arg0: i32) -> (i32, i32) {
    %c0_i32 = arith.constant 0 : i32
    %c0_i32_0 = arith.constant 0 : i32
    %c0_i32_1 = arith.constant 0 : i32
    return %c0_i32, %c0_i32_0 : i32, i32
  }
  func.func @transform_3(%arg0: i32) -> (i32, i32) {
    %c0_i32 = arith.constant 0 : i32
    %c0_i32_0 = arith.constant 0 : i32
    return %arg0, %c0_i32 : i32, i32
  }
}

</mosaic_0001>

<bundles_post_ra>
// kernel: forward.1
= control target key start
LH: loop header
LB: loop body
LE: loop exit
PB: predicated region body
PF: predicated region fallthrough
CT: control target
= control target key end

     0   :  { %8 = vsyncpa [#allocation3], 0  ;;  %s363_s0 = inlined_call_operand.hbm [shape: f32[8,24], index: 0, kind: input, shape index: {}]   ;;  %s364_s1 = inlined_call_operand.hbm [shape: f32[8,8], index: 1, kind: input, shape index: {}]   ;;  %s365_s2 = inlined_call_operand.hbm [shape: f32[296,128], index: 2, kind: input, shape index: {}]   ;;  %s366_s3 = inlined_call_operand.hbm [shape: f32[8,32], index: 3, kind: output, shape index: {}]  }
   0x1   :  { %9 = vsyncpa [#allocation6], 0  ;;  %s27_s14 = sshll.u32 %s364_s1, 4  ;;  %s28_s14 = int_to_ptr.hbm [resolvable:$true] %s27_s14 }
   0x2   :  { %10 = vsyncpa [#allocation4], 0  ;;  %s325_s15 = smov [#allocation5]   ;;  %s16_s19 = sshll.u32 %s363_s0, 4  ;;  %s17_s19 = int_to_ptr.hbm [resolvable:$true] %s16_s19 }
   0x3   :  { %s29_s16 = sshll.u32 %s325_s15, 4  ;;  %s326_s20 = smov [#allocation2]   ;;  %s30_s16 = int_to_ptr.vmem [resolvable:$true] %s29_s16 }
   0x4   :  { %32 = dma.hbm_to_vmem [thread:$0]  %s28_s14, 128, %s30_s16, [#allocation6]  }
   0x5   :  { %s18_s21 = sshll.u32 %s326_s20, 4  ;;  %s37_s24 = sshll.u32 %s365_s2, 4  ;;  %s19_s21 = int_to_ptr.vmem [resolvable:$true] %s18_s21  ;;  %s38_s24 = int_to_ptr.hbm [resolvable:$true] %s37_s24 }
   0x6   :  { %21 = dma.hbm_to_vmem [thread:$0]  %s17_s19, 128, %s19_s21, [#allocation3]  }
   0x7   :  { %s327_s1 = smov [#allocation7]   ;;  %s328_s26 = smov 128  }
   0x8   :  { %s39_s25 = sshll.u32 %s327_s1, 4  ;;  %s329_s27 = smov 8   ;;  %s40_s25 = int_to_ptr.vmem [resolvable:$true] %s39_s25 }
   0x9   :  { %45 = dma.hbm_to_vmem [thread:$0]  %s38_s24, 4736, %s40_s25, [#allocation6], %s328_s26, %s328_s26, %s329_s27  }
   0xa   :  { %319 = dma.done.wait [#allocation3], 128  }
   0xb   :  { %320 = vsyncadd [#allocation3], 4294967168 }
   0xc   :  { %321 = dma.done.wait [#allocation6], 4864  }
   0xd   :  { %322 = vsyncadd [#allocation6], 4294962432  ;;  %vm65_vm0 = vcmask 64512   ;;  %v63_v0 = vld [vmem:[#allocation7 + $0x10] sm:$0xff]  ;;  %v62_v1 = vld [vmem:[#allocation7 + $0x8] sm:$0xff]  ;;  %vm89_vm1 = vcmask 195584  }
   0xe   :  { %v64_v2 = vld [vmem:[#allocation7 + $0x18] sm:$0xff]  ;;  %106 = vmatpush.msra.mxu1 %v63_v0  ;;  %v61_v4 = vld [vmem:[#allocation7] sm:$0xff]  ;;  %v130_v6 = vld [vmem:[#allocation7 + $0x90] sm:$0xff]  ;;  %s330_s0 = smov [#allocation8]   ;;  %s200_s30 = sshll.u32 %s366_s3, 4  ;;  %vm191_vm2 = vcmask 261120   ;;  %s201_s30 = int_to_ptr.hbm [resolvable:$true] %s200_s30 }
   0xf   :  { %84 = vmatpush.msra.mxu0 %v64_v2  ;;  %v59_v3 = vld [vmem:[#allocation5] sm:$0xff]  ;;  %v58_v7 = vld [vmem:[#allocation2] sm:$0xff]  ;;  %v129_v8 = vld [vmem:[#allocation7 + $0x88] sm:$0xff]  ;;  %s198_s2 = sshll.u32 %s330_s0, 4  ;;  %s199_s2 = int_to_ptr.vmem [resolvable:$true] %s198_s2 }
  0x10   :  { %211 = vmatmul.msk.f32.vlgmr.msra.gmra.mxu0 %vm65_vm0, %v59_v3  ;;  %v131_v5 = vld [vmem:[#allocation7 + $0x98] sm:$0xff]  ;;  %107 = vmatpush.msra.mxu1 %v62_v1  ;;  %v128_v9 = vld [vmem:[#allocation7 + $0x80] sm:$0xff]  ;;  %v126_v11 = vld [vmem:[#allocation7 + $0x70] sm:$0xff] }
  0x11   :  { %133 = vmatpush.msra.mxu2 %v131_v5  ;;  %v127_v10 = vld [vmem:[#allocation7 + $0x78] sm:$0xff]  ;;  %v125_v12 = vld [vmem:[#allocation7 + $0x68] sm:$0xff]  ;;  %v124_v13 = vld [vmem:[#allocation7 + $0x60] sm:$0xff] }
  0x12   :  { %108 = vmatpush.msra.mxu1 %v61_v4  ;;  %v123_v14 = vld [vmem:[#allocation7 + $0x58] sm:$0xff]  ;;  %v122_v15 = vld [vmem:[#allocation7 + $0x50] sm:$0xff]  ;;  %v121_v16 = vld [vmem:[#allocation7 + $0x48] sm:$0xff] }
  0x13   :  { %134 = vmatpush.msra.mxu2 %v130_v6  ;;  %212 = vmatmul.msk.f32.vlgmr.msra.gmra.mxu1 %vm89_vm1, %v58_v7  ;;  %v120_v17 = vld [vmem:[#allocation7 + $0x40] sm:$0xff]  ;;  %v119_v18 = vld [vmem:[#allocation7 + $0x38] sm:$0xff]  ;;  %v118_v19 = vld [vmem:[#allocation7 + $0x30] sm:$0xff] }
  0x14   :  { %v117_v20 = vld [vmem:[#allocation7 + $0x28] sm:$0xff]  ;;  %v116_v21 = vld [vmem:[#allocation7 + $0x20] sm:$0xff]  ;;  %v169_v22 = vld [vmem:[#allocation7 + $0x118] sm:$0xff] }
  0x15   :  { %135 = vmatpush.msra.mxu2 %v129_v8  ;;  %v168_v23 = vld [vmem:[#allocation7 + $0x110] sm:$0xff]  ;;  %171 = vmatpush.msra.mxu3 %v169_v22  ;;  %v167_v24 = vld [vmem:[#allocation7 + $0x108] sm:$0xff]  ;;  %v166_v25 = vld [vmem:[#allocation7 + $0x100] sm:$0xff] }
  0x16   :  { %v165_v26 = vld [vmem:[#allocation7 + $0xf8] sm:$0xff]  ;;  %v164_v27 = vld [vmem:[#allocation7 + $0xf0] sm:$0xff]  ;;  %v163_v28 = vld [vmem:[#allocation7 + $0xe8] sm:$0xff] }
  0x17   :  { %136 = vmatpush.msra.mxu2 %v128_v9  ;;  %172 = vmatpush.msra.mxu3 %v168_v23  ;;  %v162_v29 = vld [vmem:[#allocation7 + $0xe0] sm:$0xff]  ;;  %v161_v30 = vld [vmem:[#allocation7 + $0xd8] sm:$0xff]  ;;  %v160_v32 = vld [vmem:[#allocation7 + $0xd0] sm:$0xff] }
  0x18   :  { %v60_v31 = vld [vmem:[#allocation7 + $0x120] sm:$0xff]  ;;  %v159_v34 = vld [vmem:[#allocation7 + $0xc8] sm:$0xff]  ;;  %v157_v41 = vld [vmem:[#allocation7 + $0xb8] sm:$0xff] }
  0x19   :  { %137 = vmatpush.msra.mxu2 %v127_v10  ;;  %173 = vmatpush.msra.mxu3 %v167_v24  ;;  %v113_v35 = vperm.slane %v60_v31, 0  ;;  %v158_v40 = vld [vmem:[#allocation7 + $0xc0] sm:$0xff]  ;;  %v156_v42 = vld [vmem:[#allocation7 + $0xb0] sm:$0xff]  ;;  %v155_v43 = vld [vmem:[#allocation7 + $0xa8] sm:$0xff]  ;;  %v132_v45 = vperm.slane %v60_v31, 1  ;;  %v170_v49 = vperm.slane %v60_v31, 2 }
  0x1a   :  { %v154_v44 = vld [vmem:[#allocation7 + $0xa0] sm:$0xff] }
  0x1b   :  { %138 = vmatpush.msra.mxu2 %v126_v11  ;;  %174 = vmatpush.msra.mxu3 %v166_v25 }
  0x1d   :  { %139 = vmatpush.msra.mxu2 %v125_v12  ;;  %175 = vmatpush.msra.mxu3 %v165_v26 }
  0x1f   :  { %140 = vmatpush.msra.mxu2 %v124_v13  ;;  %176 = vmatpush.msra.mxu3 %v164_v27 }
  0x21   :  { %141 = vmatpush.msra.mxu2 %v123_v14  ;;  %177 = vmatpush.msra.mxu3 %v163_v28 }
  0x23   :  { %142 = vmatpush.msra.mxu2 %v122_v15  ;;  %178 = vmatpush.msra.mxu3 %v162_v29 }
  0x25   :  { %143 = vmatpush.msra.mxu2 %v121_v16  ;;  %179 = vmatpush.msra.mxu3 %v161_v30 }
  0x27   :  { %144 = vmatpush.msra.mxu2 %v120_v17  ;;  %180 = vmatpush.msra.mxu3 %v160_v32 }
  0x29   :  { %145 = vmatpush.msra.mxu2 %v119_v18  ;;  %181 = vmatpush.msra.mxu3 %v159_v34 }
  0x2b   :  { %146 = vmatpush.msra.mxu2 %v118_v19  ;;  %182 = vmatpush.msra.mxu3 %v158_v40 }
  0x2d   :  { %147 = vmatpush.msra.mxu2 %v117_v20  ;;  %183 = vmatpush.msra.mxu3 %v157_v41 }
  0x2f   :  { %148 = vmatpush.msra.mxu2 %v116_v21  ;;  %184 = vmatpush.msra.mxu3 %v156_v42 }
  0x31   :  { %185 = vmatpush.msra.mxu3 %v155_v43 }
  0x33   :  { %186 = vmatpush.msra.mxu3 %v154_v44 }
  0x8d   :  { %v86_v33 = vpop.f32.mrf.mxu0 }
  0x90   :  { %v110_v36 = vpop.f32.mrf.mxu1 }
  0x91   :  { %v111_v37 = vadd.f32 %v110_v36, %v86_v33 }
  0x93   :  { %v114_v38 = vadd.f32 %v113_v35, %v111_v37 }
  0x95   :  { %219 = vtanh.f32 %v114_v38 }
  0x9b   :  { %v220_v39 = vpop.eup %219 }
  0x9c   :  { %149 = vmatmul.f32.vlgmr.msra.gmra.mxu2 %v220_v39 }
 0x11f   :  { %v150_v46 = vpop.f32.mrf.mxu2 }
 0x120   :  { %v151_v47 = vadd.f32 %v150_v46, %v132_v45 }
 0x122   :  { %221 = vtanh.f32 %v151_v47 }
 0x128   :  { %v222_v48 = vpop.eup %221 }
 0x129   :  { %187 = vmatmul.f32.vlgmr.msra.gmra.mxu3 %v222_v48 }
 0x1ac   :  { %v188_v50 = vpop.f32.mrf.mxu3 }
 0x1ad   :  { %v189_v51 = vadd.f32 %v188_v50, %v170_v49 }
 0x1af   :  { %192 = vst.msk [vmem:[#allocation8] sm:$0xff] %vm191_vm2, %v189_v51 }
 0x1b0   :  { %203 = dma.vmem_to_hbm [thread:$0]  %s199_s2, 128, %s201_s30, [#allocation4]  }
 0x1b1   :  { %323 = dma.done.wait [#allocation4], 128  }
 0x1b2   :  { %324 = vsyncadd [#allocation4], 4294967168 }
 0x1b3   :  { %208 = vsyncpa [#allocation3], 1 }
 0x1b4   :  { %209 = vsyncpa [#allocation6], 1 }
 0x1b5   :  { %210 = vsyncpa [#allocation4], 1 }

</bundles_post_ra>
